<compile_context>
chip_gen: v7x
topology: tpu7x:2x2x1
jax: 0.10.0
libtpu: 0.0.40
codegen_flags: <defaults>
</compile_context>

<pallas_src>
import jax
import jax.numpy as jnp
from jax.experimental import pallas as pl
from jax.experimental.pallas import tpu as pltpu


def _new_attention_kernel(v_ref, q_ref, wv_ref, bv_ref, wq_ref, bq_ref,
                          wl_ref, out_ref):
    # v_ref:  [TB*K, VD]  -- TB batch elements, flattened over k
    # q_ref:  [TB, QD]
    # wl_ref: [1, H]      -- final Linear weight as a row vector
    # out_ref:[K, TB]     -- transposed output, batch on the lane axis
    tb = q_ref.shape[0]
    k = v_ref.shape[0] // tb

    # Fused projections over all TB batch elements (large-M MXU matmuls).
    v_proj = jnp.maximum(
        jnp.dot(v_ref[...], wv_ref[...], preferred_element_type=jnp.float32)
        + bv_ref[...], 0.0)                                   # [TB*K, H]
    q_proj = jnp.maximum(
        jnp.dot(q_ref[...], wq_ref[...], preferred_element_type=jnp.float32)
        + bq_ref[...], 0.0)                                   # [TB, H]

    # Final Linear(H, 1) folded into the elementwise stage:
    #   logits[b, k] = sum_h v_proj[b, k, h] * (q_proj[b, h] * wl[h])
    # (VPU multiply + XLU lane reduce instead of an N=1 MXU matmul; the final
    #  bias is omitted because softmax is shift-invariant.)
    s = q_proj * wl_ref[...]                                  # [TB, H]
    logits = jnp.sum(v_proj.reshape(tb, k, -1) * s[:, None, :],
                     axis=-1)                                 # [TB, K]

    # Softmax over k (last axis); normalization via EUP reciprocal.
    m = jnp.max(logits, axis=-1, keepdims=True)
    e = jnp.exp(logits - m)
    w = e * pl.reciprocal(jnp.sum(e, axis=-1, keepdims=True), approx=True)

    out_ref[...] = w.T.astype(out_ref.dtype)                  # store [K, TB]


def new_attention(v, q, params, *, batch_tile=128, compute_dtype=None):
    """v: [batch, k, v_dim] f32, q: [batch, q_dim] f32 -> [batch, k, 1] f32."""
    B, K, VD = v.shape
    QD = q.shape[1]
    H = params["wv"].shape[1]

    wv, wq = params["wv"], params["wq"]
    bv, bq = params["bv"], params["bq"]
    wl_row = params["wl"].reshape(1, H)   # [H,1] -> [1,H] row for the kernel
    if compute_dtype is not None:         # e.g. jnp.bfloat16 on v6e/v7x
        v, q = v.astype(compute_dtype), q.astype(compute_dtype)
        wv, wq = wv.astype(compute_dtype), wq.astype(compute_dtype)

    # Batch tiling: TB batch elements per grid step.  If tiling is needed,
    # keep TB a multiple of 8 (sublane) / 128 (lane-dense stores) and pad B.
    if B <= batch_tile:
        tb, b_pad = B, B
    else:
        tb = batch_tile
        b_pad = pl.cdiv(B, tb) * tb
        v = jnp.pad(v, ((0, b_pad - B), (0, 0), (0, 0)))
        q = jnp.pad(q, ((0, b_pad - B), (0, 0)))

    v_flat = v.reshape(b_pad * K, VD)

    out_t = pl.pallas_call(
        _new_attention_kernel,
        out_shape=jax.ShapeDtypeStruct((K, b_pad), jnp.float32),
        grid=(b_pad // tb,),
        in_specs=[
            pl.BlockSpec((tb * K, VD), lambda b: (b, 0)),   # v (batch-flattened)
            pl.BlockSpec((tb, QD),     lambda b: (b, 0)),   # q
            pl.BlockSpec((VD, H),      lambda b: (0, 0)),   # Wv  [in, out]
            pl.BlockSpec((1, H),       lambda b: (0, 0)),   # bv
            pl.BlockSpec((QD, H),      lambda b: (0, 0)),   # Wq  [in, out]
            pl.BlockSpec((1, H),       lambda b: (0, 0)),   # bq
            pl.BlockSpec((1, H),       lambda b: (0, 0)),   # Wl row
        ],
        out_specs=pl.BlockSpec((K, tb), lambda b: (0, b)),
        compiler_params=pltpu.CompilerParams(
            dimension_semantics=("parallel",)),   # shards grid across TCs on v7x
    )(v_flat, q, wv, bv, wq, bq, wl_row)

    # [K, B_pad] -> [B, K, 1]
    return out_t.T[:B].reshape(B, K, 1)


def init_params(key, v_dim, q_dim, num_hid):
    """Deterministic synthetic params.  weight_norm(dim=None) folded in."""
    ks = jax.random.split(key, 6)

    def weight_norm_eff(w):
        # effective weight = g * V / ||V||_F, with g initialized to ||V||_F
        g = jnp.sqrt(jnp.sum(w * w))
        return g * w / jnp.sqrt(jnp.sum(w * w))

    # PyTorch nn.Linear stores weight as [out, in]; we transpose to [in, out].
    Wv = jax.random.normal(ks[0], (num_hid, v_dim), jnp.float32) * 0.1
    Wq = jax.random.normal(ks[1], (num_hid, q_dim), jnp.float32) * 0.1
    Wl = jax.random.normal(ks[2], (1, q_dim), jnp.float32) * 0.1  # Linear(q_dim, 1)
    bv = jax.random.normal(ks[3], (num_hid,), jnp.float32) * 0.1
    bq = jax.random.normal(ks[4], (num_hid,), jnp.float32) * 0.1
    bl = jax.random.normal(ks[5], (1,), jnp.float32) * 0.1

    return {
        "wv": weight_norm_eff(Wv).T, "bv": bv.reshape(1, num_hid),
        "wq": weight_norm_eff(Wq).T, "bq": bq.reshape(1, num_hid),
        "wl": weight_norm_eff(Wl).T, "bl": bl.reshape(1, 1),
    }


def _reference(v, q, p):
    v_proj = jnp.maximum(jnp.einsum("bkd,dh->bkh", v, p["wv"]) + p["bv"][0], 0.0)
    q_proj = jnp.maximum(q @ p["wq"] + p["bq"][0], 0.0)
    joint = v_proj * q_proj[:, None, :]
    logits = jnp.einsum("bkh,ho->bko", joint, p["wl"]) + p["bl"][0]
    return jax.nn.softmax(logits, axis=1)


if __name__ == "__main__":
    batch, k, v_dim = 2, 8, 16
    q_dim = num_hid = 32  # must match: module's final Linear is Linear(q_dim, 1)

    key = jax.random.PRNGKey(0)
    kv, kq, kp = jax.random.split(key, 3)
    v = jax.random.normal(kv, (batch, k, v_dim), jnp.float32)
    q = jax.random.normal(kq, (batch, q_dim), jnp.float32)
    params = init_params(kp, v_dim, q_dim, num_hid)

    out = new_attention(v, q, params)
    out = jax.block_until_ready(out)

    ref = _reference(v, q, params)
    assert out.shape == (batch, k, 1)
    # approx=True reciprocal -> slightly looser tolerance than exact division
    assert jnp.allclose(out, ref, atol=1e-3, rtol=1e-3)

    print("KERNEL_OK")
</pallas_src>

<mosaic_0001>
module attributes {stable_mosaic.version = 11 : i64} {
  func.func @_new_attention_kernel(%arg0: i32, %arg1: memref<16x16xf32, #tpu.memory_space<vmem>>, %arg2: memref<2x32xf32, #tpu.memory_space<vmem>>, %arg3: memref<16x32xf32, #tpu.memory_space<vmem>>, %arg4: memref<1x32xf32, #tpu.memory_space<vmem>>, %arg5: memref<32x32xf32, #tpu.memory_space<vmem>>, %arg6: memref<1x32xf32, #tpu.memory_space<vmem>>, %arg7: memref<1x32xf32, #tpu.memory_space<vmem>>, %arg8: memref<8x2xf32, #tpu.memory_space<vmem>>) attributes {dimension_semantics = [#tpu.dimension_semantics<parallel>], iteration_bounds = array<i64: 1>, scalar_prefetch = 0 : i64, scratch_operands = 0 : i64, tpu.core_type = #tpu.core_type<tc>, window_params = [{transform_indices = @transform_0, window_bounds = array<i64: 16, 16>}, {transform_indices = @transform_1, window_bounds = array<i64: 2, 32>}, {pipeline_mode = #tpu.pipeline_mode<synchronous>, transform_indices = @transform_2, window_bounds = array<i64: 16, 32>}, {pipeline_mode = #tpu.pipeline_mode<synchronous>, transform_indices = @transform_3, window_bounds = array<i64: 1, 32>}, {pipeline_mode = #tpu.pipeline_mode<synchronous>, transform_indices = @transform_4, window_bounds = array<i64: 32, 32>}, {pipeline_mode = #tpu.pipeline_mode<synchronous>, transform_indices = @transform_5, window_bounds = array<i64: 1, 32>}, {pipeline_mode = #tpu.pipeline_mode<synchronous>, transform_indices = @transform_6, window_bounds = array<i64: 1, 32>}, {transform_indices = @transform_7, window_bounds = array<i64: 8, 2>}]} {
    %c0 = arith.constant 0 : index
    %c0_0 = arith.constant 0 : index
    %0 = vector.load %arg1[%c0, %c0_0] : memref<16x16xf32, #tpu.memory_space<vmem>>, vector<16x16xf32>
    %c0_1 = arith.constant 0 : index
    %c0_2 = arith.constant 0 : index
    %1 = vector.load %arg3[%c0_1, %c0_2] : memref<16x32xf32, #tpu.memory_space<vmem>>, vector<16x32xf32>
    %cst = arith.constant dense<0.000000e+00> : vector<16x32xf32>
    %2 = tpu.matmul %0, %1, %cst {dimension_numbers = #tpu.dot_dimension_numbers<[1], [0], [0], [1], [0, 0, 1, 1], [], []>} : vector<16x16xf32>, vector<16x32xf32>, vector<16x32xf32> -> vector<16x32xf32>
    %c0_3 = arith.constant 0 : index
    %c0_4 = arith.constant 0 : index
    %3 = vector.load %arg4[%c0_3, %c0_4] : memref<1x32xf32, #tpu.memory_space<vmem>>, vector<1x32xf32>
    %4 = vector.broadcast %3 : vector<1x32xf32> to vector<16x32xf32>
    %5 = arith.addf %2, %4 : vector<16x32xf32>
    %cst_5 = arith.constant 0.000000e+00 : f32
    %6 = vector.broadcast %cst_5 : f32 to vector<16x32xf32>
    %7 = arith.maximumf %5, %6 : vector<16x32xf32>
    %c0_6 = arith.constant 0 : index
    %c0_7 = arith.constant 0 : index
    %8 = vector.load %arg2[%c0_6, %c0_7] : memref<2x32xf32, #tpu.memory_space<vmem>>, vector<2x32xf32>
    %c0_8 = arith.constant 0 : index
    %c0_9 = arith.constant 0 : index
    %9 = vector.load %arg5[%c0_8, %c0_9] : memref<32x32xf32, #tpu.memory_space<vmem>>, vector<32x32xf32>
    %cst_10 = arith.constant dense<0.000000e+00> : vector<2x32xf32>
    %10 = tpu.matmul %8, %9, %cst_10 {dimension_numbers = #tpu.dot_dimension_numbers<[1], [0], [0], [1], [0, 0, 1, 1], [], []>} : vector<2x32xf32>, vector<32x32xf32>, vector<2x32xf32> -> vector<2x32xf32>
    %c0_11 = arith.constant 0 : index
    %c0_12 = arith.constant 0 : index
    %11 = vector.load %arg6[%c0_11, %c0_12] : memref<1x32xf32, #tpu.memory_space<vmem>>, vector<1x32xf32>
    %12 = vector.broadcast %11 : vector<1x32xf32> to vector<2x32xf32>
    %13 = arith.addf %10, %12 : vector<2x32xf32>
    %cst_13 = arith.constant 0.000000e+00 : f32
    %14 = vector.broadcast %cst_13 : f32 to vector<2x32xf32>
    %15 = arith.maximumf %13, %14 : vector<2x32xf32>
    %c0_14 = arith.constant 0 : index
    %c0_15 = arith.constant 0 : index
    %16 = vector.load %arg7[%c0_14, %c0_15] : memref<1x32xf32, #tpu.memory_space<vmem>>, vector<1x32xf32>
    %17 = vector.broadcast %16 : vector<1x32xf32> to vector<2x32xf32>
    %18 = arith.mulf %15, %17 : vector<2x32xf32>
    %19 = vector.shape_cast %7 : vector<16x32xf32> to vector<2x8x32xf32>
    %20 = vector.shape_cast %18 : vector<2x32xf32> to vector<2x1x32xf32>
    %21 = vector.broadcast %20 : vector<2x1x32xf32> to vector<2x8x32xf32>
    %22 = arith.mulf %19, %21 : vector<2x8x32xf32>
    %cst_16 = arith.constant dense<0.000000e+00> : vector<2x8xf32>
    %23 = vector.multi_reduction <add>, %22, %cst_16 [2] : vector<2x8x32xf32> to vector<2x8xf32>
    %cst_17 = arith.constant dense<0xFF800000> : vector<2xf32>
    %24 = vector.multi_reduction <maximumf>, %23, %cst_17 [1] : vector<2x8xf32> to vector<2xf32>
    %25 = vector.shape_cast %24 : vector<2xf32> to vector<2x1xf32>
    %26 = vector.broadcast %25 : vector<2x1xf32> to vector<2x8xf32>
    %27 = arith.subf %23, %26 : vector<2x8xf32>
    %28 = math.exp %27 : vector<2x8xf32>
    %cst_18 = arith.constant dense<0.000000e+00> : vector<2xf32>
    %29 = vector.multi_reduction <add>, %28, %cst_18 [1] : vector<2x8xf32> to vector<2xf32>
    %30 = vector.shape_cast %29 : vector<2xf32> to vector<2x1xf32>
    %31 = tpu.reciprocal %30 {approx = true} : vector<2x1xf32> -> vector<2x1xf32>
    %32 = vector.broadcast %31 : vector<2x1xf32> to vector<2x8xf32>
    %33 = arith.mulf %28, %32 : vector<2x8xf32>
    %34 = tpu.transpose %33, [1, 0] : vector<2x8xf32> -> vector<8x2xf32>
    %c0_19 = arith.constant 0 : index
    %c0_20 = arith.constant 0 : index
    %35 = vector.load %arg8[%c0_19, %c0_20] : memref<8x2xf32, #tpu.memory_space<vmem>>, vector<8x2xf32>
    tpu.vector_store %arg8[%c0_19, %c0_20], %34 {strides = array<i32>} : memref<8x2xf32, #tpu.memory_space<vmem>>, vector<8x2xf32>,
    return
  }
  func.func @transform_0(%arg0: i32) -> (i32, i32) {
    %c0_i32 = arith.constant 0 : i32
    %c0_i32_0 = arith.constant 0 : i32
    return %arg0, %c0_i32 : i32, i32
  }
  func.func @transform_1(%arg0: i32) -> (i32, i32) {
    %c0_i32 = arith.constant 0 : i32
    %c0_i32_0 = arith.constant 0 : i32
    return %arg0, %c0_i32 : i32, i32
  }
  func.func @transform_2(%arg0: i32) -> (i32, i32) {
    %c0_i32 = arith.constant 0 : i32
    %c0_i32_0 = arith.constant 0 : i32
    %c0_i32_1 = arith.constant 0 : i32
    return %c0_i32, %c0_i32_0 : i32, i32
  }
  func.func @transform_3(%arg0: i32) -> (i32, i32) {
    %c0_i32 = arith.constant 0 : i32
    %c0_i32_0 = arith.constant 0 : i32
    %c0_i32_1 = arith.constant 0 : i32
    return %c0_i32, %c0_i32_0 : i32, i32
  }
  func.func @transform_4(%arg0: i32) -> (i32, i32) {
    %c0_i32 = arith.constant 0 : i32
    %c0_i32_0 = arith.constant 0 : i32
    %c0_i32_1 = arith.constant 0 : i32
    return %c0_i32, %c0_i32_0 : i32, i32
  }
  func.func @transform_5(%arg0: i32) -> (i32, i32) {
    %c0_i32 = arith.constant 0 : i32
    %c0_i32_0 = arith.constant 0 : i32
    %c0_i32_1 = arith.constant 0 : i32
    return %c0_i32, %c0_i32_0 : i32, i32
  }
  func.func @transform_6(%arg0: i32) -> (i32, i32) {
    %c0_i32 = arith.constant 0 : i32
    %c0_i32_0 = arith.constant 0 : i32
    %c0_i32_1 = arith.constant 0 : i32
    return %c0_i32, %c0_i32_0 : i32, i32
  }
  func.func @transform_7(%arg0: i32) -> (i32, i32) {
    %c0_i32 = arith.constant 0 : i32
    %c0_i32_0 = arith.constant 0 : i32
    return %c0_i32, %arg0 : i32, i32
  }
}

</mosaic_0001>

<bundles_post_ra>
// kernel: tpu_custom_call.1
= control target key start
LH: loop header
LB: loop body
LE: loop exit
PB: predicated region body
PF: predicated region fallthrough
CT: control target
= control target key end

     0   :  { %12 = vsyncpa [#allocation3], 0  ;;  %s691_s0 = inlined_call_operand.hbm [shape: f32[16,16], index: 0, kind: input, shape index: {}]   ;;  %s692_s1 = inlined_call_operand.vmem [shape: f32[2,32], index: 1, kind: input, shape index: {}]   ;;  %s693_s2 = inlined_call_operand.hbm [shape: f32[16,32], index: 2, kind: input, shape index: {}]   ;;  %s694_s3 = inlined_call_operand.vmem [shape: f32[1,32], index: 3, kind: input, shape index: {}]   ;;  %s695_s4 = inlined_call_operand.hbm [shape: f32[32,32], index: 4, kind: input, shape index: {}]   ;;  %s696_s5 = inlined_call_operand.vmem [shape: f32[1,32], index: 5, kind: input, shape index: {}]   ;;  %s697_s6 = inlined_call_operand.vmem [shape: f32[1,32], index: 6, kind: input, shape index: {}]   ;;  %s698_s7 = inlined_call_operand.vmem [shape: f32[8,2], index: 7, kind: output, shape index: {}]  }
   0x1   :  { %13 = vsyncpa [#allocation5], 0  ;;  %s558_s24 = smov [#allocation4]   ;;  %s559_s26 = smov [#allocation2]  }
   0x2   :  { %s33_s25 = sshll.u32 %s558_s24, 4  ;;  %s19_s27 = sshll.u32 %s559_s26, 4  ;;  %s34_s25 = int_to_ptr.vmem [resolvable:$true] %s33_s25  ;;  %s608_s27 = int_to_ptr.vmem [resolvable:$true] %s19_s27 }
   0x3   :  { %s488_s30 = scalar_lea.hbm %s693_s2, 256 }
   0x4   :  { %p489_p0 = scmp.ne.s32.totalorder %s693_s2, %s488_s30  ;;  %p492_p1 = scmp.lt.u32.totalorder %s488_s30, %s693_s2 }
   0x6   :  { %p494_p2 = pnand %p492_p1, %p489_p0 }
   0x8   :  { %497 = shalt.err (!%p494_p2)
}
   0x9   :  { %s498_s12 = scalar_lea.vmem %s34_s25, 256  ;;  %p503_p4 = scmp.lt.s32.totalorder %s34_s25, %s34_s25 }
   0xa   :  { %p499_p3 = scmp.ne.s32.totalorder %s34_s25, %s498_s12  ;;  %p504_p5 = scmp.lt.s32.totalorder %s498_s12, %s498_s12 }
   0xc   :  { %p505_p6 = por %p504_p5, %p503_p4 }
   0xe   :  { %p506_p7 = pnand %p505_p6, %p499_p3 }
  0x10   :  { %509 = shalt.err (!%p506_p7)
}
  0x11   :  { %s560_s13 = smov 128   ;;  %s561_s14 = smov 8  }
  0x12   :  { %39 = dma.hbm_to_vmem [thread:$0]  %s693_s2, 256, %s34_s25, [#allocation5], %s560_s13, %s560_s13, %s561_s14  }
  0x13   :  { %s510_s19 = scalar_lea.hbm %s691_s0, 256 }
  0x14   :  { %p511_p8 = scmp.ne.s32.totalorder %s691_s0, %s510_s19  ;;  %p514_p9 = scmp.lt.u32.totalorder %s510_s19, %s691_s0 }
  0x16   :  { %p516_p10 = pnand %p514_p9, %p511_p8 }
  0x18   :  { %519 = shalt.err (!%p516_p10)
}
  0x19   :  { %s520_s24 = scalar_lea.vmem %s608_s27, 256  ;;  %p525_p12 = scmp.lt.s32.totalorder %s608_s27, %s608_s27 }
  0x1a   :  { %p521_p11 = scmp.ne.s32.totalorder %s608_s27, %s520_s24  ;;  %p526_p13 = scmp.lt.s32.totalorder %s520_s24, %s520_s24 }
  0x1c   :  { %p527_p0 = por %p526_p13, %p525_p12 }
  0x1e   :  { %p528_p1 = pnand %p527_p0, %p521_p11 }
  0x20   :  { %531 = shalt.err (!%p528_p1)
}
  0x21   :  { %25 = dma.hbm_to_vmem [thread:$0]  %s691_s0, 256, %s608_s27, [#allocation3], %s560_s13, %s560_s13, %s561_s14  }
  0x22   :  { %s562_s26 = smov [#allocation6]   ;;  %s532_s8 = scalar_lea.hbm %s695_s4, 512 }
  0x23   :  { %s47_s28 = sshll.u32 %s562_s26, 4  ;;  %p533_p2 = scmp.ne.s32.totalorder %s695_s4, %s532_s8  ;;  %s48_s28 = int_to_ptr.vmem [resolvable:$true] %s47_s28 }
  0x24   :  { %p536_p3 = scmp.lt.u32.totalorder %s532_s8, %s695_s4 }
  0x26   :  { %p538_p4 = pnand %p536_p3, %p533_p2 }
  0x28   :  { %541 = shalt.err (!%p538_p4)
}
  0x29   :  { %s542_s15 = scalar_lea.vmem %s48_s28, 512  ;;  %p547_p6 = scmp.lt.s32.totalorder %s48_s28, %s48_s28 }
  0x2a   :  { %p543_p5 = scmp.ne.s32.totalorder %s48_s28, %s542_s15  ;;  %p548_p7 = scmp.lt.s32.totalorder %s542_s15, %s542_s15 }
  0x2c   :  { %p549_p8 = por %p548_p7, %p547_p6 }
  0x2e   :  { %p550_p9 = pnand %p549_p8, %p543_p5 }
  0x30   :  { %553 = shalt.err (!%p550_p9)
}
  0x31   :  { %53 = dma.hbm_to_vmem [thread:$0]  %s695_s4, 512, %s48_s28, [#allocation5], %s560_s13, %s560_s13, %s561_s14  }
  0x32   :  { %554 = dma.done.wait [#allocation3], 256  }
  0x33   :  { %555 = vsyncadd [#allocation3], 4294967040 }
  0x34   :  { %556 = dma.done.wait [#allocation5], 768  }
  0x35   :  { %557 = vsyncadd [#allocation5], 4294966528  ;;  %v563_v0 = vmov 0.0|0.0   ;;  %vm564_vm0 = vmmov 0   ;;  %v565_v1 = vmov 0.0   ;;  %v163_v2 = vld [vmem:[#allocation6] sm:$0xff]  ;;  %v261_v16 = vlaneseq }
  0x36   :  { %464 = vmatprep.subr.bf16.mxu1 %v563_v0  ;;  %457 = vmatprep.mubr.msk.f32.mxu1 %vm564_vm0, %v565_v1  ;;  %v164_v3 = vld [vmem:[#allocation6 + $0x8] sm:$0xff]  ;;  %v165_v4 = vld [vmem:[#allocation6 + $0x10] sm:$0xff]  ;;  %vm78_vm1 = vcmask 130048   ;;  %v166_v6 = vld [vmem:[#allocation6 + $0x18] sm:$0xff]  ;;  %vm174_vm2 = vcmask 261120   ;;  %vm310_vm3 = vcmask 1041409  }
  0x37   :  { %v465_v5 = vpack.c.bf16 %v164_v3, %v163_v2  ;;  %v69_v7 = vld [vmem:[#allocation4] sm:$0xff]  ;;  %v70_v8 = vld [vmem:[#allocation4 + $0x8] sm:$0xff]  ;;  %v67_v9 = vld [vmem:[#allocation2] sm:$0xff]  ;;  %v468_v10 = vpack.c.bf16 %v166_v6, %v165_v4  ;;  %v566_v14 = vmov 1966171168   ;;  %v669_v19 = vshrl.u32 %v261_v16, 7 }
  0x38   :  { %v460_v11 = vpack.c.bf16 %v70_v8, %v69_v7  ;;  %446 = vmatprep.mubr.msk.f32.mxu0 %vm78_vm1, %v67_v9  ;;  %v68_v12 = vld [vmem:[#allocation2 + $0x8] sm:$0xff]  ;;  %v162_v13 = vld [vmem:[%s692_s1] sm:$0x3]  ;;  %v259_v15 = vunpack.c.l.s4 %v566_v14  ;;  %v301_v45 = vand.u32 127, %v261_v16  ;;  %vm313_vm4 = vcmask 58368  }
  0x39   :  { %466 = vmatpush3.bf16.msra.mxu1 %v465_v5  ;;  %v430_v17 = vld [vmem:[%s696_s5] ss:$0 sm:$0xff]  ;;  %v282_v32 = vsub.s32 0, %v669_v19  ;;  %v567_v53 = vmov 0   ;;  %v324_v54 = vsub.s32 1, %v669_v19  ;;  %vm419_vm5 = vcmask 15360  }
  0x3a   :  { %467 = vmatprep.subr.bf16.mxu1 %v563_v0  ;;  %461 = vmatprep.subr.bf16.mxu0 %v460_v11  ;;  %v260_v18 = vunpack.c.0.s8 %v259_v15  ;;  %v432_v25 = vld [vmem:[%s697_s6] ss:$0 sm:$0xff]  ;;  %v304_v47 = vsub.s32 %v301_v45, %v669_v19 }
  0x3b   :  { %463 = vmatpush3.bf16.msra.mxu0 %v460_v11  ;;  %v427_v26 = vld [vmem:[%s694_s3] ss:$0 sm:$0xff]  ;;  %481 = vset.pattern.permute.xlu0 %v567_v53 }
  0x3c   :  { %v263_v28 = vsub.s32 %v260_v18, %v669_v19  ;;  %480 = vset.pattern.permute.xlu1 %v567_v53 }
  0x3d   :  { %469 = vmatpush3.bf16.msra.mxu1 %v468_v10 }
  0x3e   :  { %447 = vmatmul.mubr.msk.f32.vlgmr.msra.gmra.mrb[0].mxu0 %vm78_vm1, %v68_v12 }
  0x40   :  { %458 = vmatmul.mubr.msk.f32.vlgmr.msra.gmra.mrb[0].mxu1 %vm174_vm2, %v162_v13 }
 0x111   :  { %v448_v20 = vpop.f32.mrb[0].mxu0 }
 0x112   :  { %v151_v22 = vpop.f32.mrb[1].mxu0  ;;  %v157_v34 = vadd.f32 %v448_v20, %v427_v26 }
 0x113   :  { %v244_v21 = vpop.f32.mrb[0].mxu1  ;;  %v152_v30 = vadd.f32 %v427_v26, %v151_v22 }
 0x114   :  { %v245_v23 = vadd.f32 %v430_v17, %v244_v21  ;;  %v459_v24 = vpop.f32.mrb[1].mxu1  ;;  %v161_v39 = vmax.f32 %v157_v34, 0.0 }
 0x115   :  { %v160_v35 = vmax.f32 %v152_v30, 0.0 }
 0x116   :  { %v248_v27 = vmax.f32 %v245_v23, 0.0 }
 0x118   :  { %v256_v29 = vmul.f32 %v432_v25, %v248_v27 }
 0x11a   :  { %v264_v31 = vrot.slane %v256_v29, %v263_v28 }
 0x11c   :  { %v265_v33 = vcombine.high %v264_v31, %v264_v31  ;;  %v272_v36 = vrot.slane %v264_v31, %v263_v28 }
 0x11e   :  { %v283_v37 = vrot.slane %v272_v36, %v282_v32  ;;  %v279_v38 = vrot.slane %v265_v33, %v263_v28 }
 0x120   :  { %v290_v40 = vmul.f32 %v283_v37, %v160_v35  ;;  %v287_v41 = vrot.slane %v279_v38, %v282_v32 }
 0x122   :  { %v292_v42 = vsel %vm174_vm2, %v290_v40, 0.0  ;;  %v291_v43 = vmul.f32 %v287_v41, %v161_v39 }
 0x123   :  { %293 = vadd.xlane.f32.xlu0 %v292_v42 }
 0x124   :  { %v295_v44 = vsel %vm174_vm2, %v291_v43, 0.0 }
 0x127   :  { %296 = vadd.xlane.f32.xlu0 %v295_v44 }
 0x1b0   :  { %v294_v46 = vpop.xlane.xlu0 %293 }
 0x1b1   :  { %v305_v49 = vrot.slane %v294_v46, %v304_v47 }
 0x1b4   :  { %v297_v48 = vpop.xlane.xlu0 %296 }
 0x1b5   :  { %v309_v50 = vrot.slane %v297_v48, %v304_v47 }
 0x1b7   :  { %v311_v51 = vsel %vm310_vm3, %v309_v50, %v305_v49 }
 0x1b8   :  { %v314_v52 = vsel %vm313_vm4, %v311_v51, -inf }
 0x1b9   :  { %315 = vmax.xlane.f32.xlu1 %v314_v52 }
 0x246   :  { %v316_v55 = vpop.xlane.xlu1 %315 }
 0x247   :  { %v321_v56 = vrot.slane %v316_v55, %v282_v32  ;;  %v325_v57 = vrot.slane %v316_v55, %v324_v54 }
 0x249   :  { %v328_v58 = vsub.f32 %v294_v46, %v321_v56  ;;  %v329_v59 = vsub.f32 %v297_v48, %v325_v57 }
 0x24b   :  { %v330_v60 = vmul.f32 1.442695, %v328_v58  ;;  %v332_v61 = vmul.f32 1.442695, %v329_v59 }
 0x24d   :  { %482 = vpow2.f32 %v330_v60 }
 0x24e   :  { %484 = vpow2.f32 %v332_v61 }
 0x257   :  { %v483_v62 = vpop.eup %482 }
 0x258   :  { %v485_v63 = vpop.eup %484  ;;  %337 = vperm.xlu1 %480, %v483_v62  }
 0x259   :  { %340 = vperm.xlu0 %481, %v485_v63  }
 0x2d7   :  { %v338_v0 = vpop.permute.xlu1 %337 }
 0x2d8   :  { %v341_v1 = vpop.permute.xlu0 %340  ;;  %v345_v2 = vrot.slane %v338_v0, %v304_v47 }
 0x2d9   :  { %v349_v3 = vrot.slane %v341_v1, %v304_v47 }
 0x2db   :  { %v350_v4 = vsel %vm310_vm3, %v349_v3, %v345_v2 }
 0x2dc   :  { %v352_v5 = vsel %vm313_vm4, %v350_v4, 0.0 }
 0x2dd   :  { %353 = vadd.xlane.f32.xlu1 %v352_v5 }
 0x36a   :  { %v354_v6 = vpop.xlane.xlu1 %353 }
 0x36b   :  { %486 = vrcp.f32 %v354_v6 }
 0x375   :  { %v487_v7 = vpop.eup %486 }
 0x376   :  { %v360_v8 = vrot.slane %v487_v7, %v282_v32  ;;  %v364_v10 = vrot.slane %v487_v7, %v324_v54 }
 0x378   :  { %v367_v9 = vmul.f32 %v483_v62, %v360_v8  ;;  %v368_v11 = vmul.f32 %v485_v63, %v364_v10 }
 0x37a   :  { %372 = vperm.xlu0 %481, %v367_v9  }
 0x37e   :  { %375 = vperm.xlu0 %481, %v368_v11  }
 0x3f9   :  { %v373_v12 = vpop.permute.xlu0 %372 }
 0x3fa   :  { %v380_v14 = vrot.slane %v373_v12, %v304_v47 }
 0x3fd   :  { %v376_v13 = vpop.permute.xlu0 %375 }
 0x3fe   :  { %v384_v15 = vrot.slane %v376_v13, %v304_v47 }
 0x400   :  { %v385_v16 = vsel %vm310_vm3, %v384_v15, %v380_v14 }
 0x401   :  { %387 = vxpose.xlu1.b32.start.end [1/1] (short) (narrow) %v385_v16, 8 }
 0x481   :  { %v403_v17 = vpop.trf.xlu1 }
 0x482   :  { %420 = vst.msk [vmem:[%s698_s7] sm:$0xff] %vm419_vm5, %v403_v17 }
 0x483   :  { %425 = vsyncpa [#allocation3], 1 }
 0x484   :  { %426 = vsyncpa [#allocation5], 1 }

</bundles_post_ra>
